<compile_context>
chip_gen: v6e
topology: v6e:2x2x1
jax: 0.10.0
libtpu: 0.0.40
codegen_flags: <defaults>
</compile_context>

<pallas_src>
import functools
import math

import jax
import jax.numpy as jnp
from jax.experimental import pallas as pl
from jax.experimental.pallas import tpu as pltpu

_LANE = 128
_MAX_TILE_ROWS = 2048      # 2048 * 128 * 4 B = 1 MiB per input per buffer
_LOG2 = math.log(2.0)


def _round_up(x: int, m: int) -> int:
    return (x + m - 1) // m * m


def _logcosh_partial_kernel(yt_ref, yp_ref, out_ref, *,
                            tile_rows: int, n_true: int, masked: bool):
    """Write one (8, 128) partial sum of log(cosh(diff)) per grid step."""
    i = pl.program_id(0)

    yt = yt_ref[...].astype(jnp.float32)
    yp = yp_ref[...].astype(jnp.float32)
    d = (yt - yp) + jnp.float32(1e-12)

    # Numerically stable log(cosh(d)) = |d| + log1p(exp(-2|d|)) - log(2).
    a = jnp.abs(d)
    val = a + jnp.log1p(jnp.exp(jnp.float32(-2.0) * a)) - jnp.float32(_LOG2)

    if masked:  # static: only emitted when the flat size needed padding
        rows, lanes = val.shape
        row_idx = jax.lax.broadcasted_iota(jnp.int32, (rows, lanes), 0)
        lane_idx = jax.lax.broadcasted_iota(jnp.int32, (rows, lanes), 1)
        gidx = (i * tile_rows + row_idx) * lanes + lane_idx
        val = jnp.where(gidx < n_true, val, jnp.float32(0.0))

    # Fold (tile_rows, 128) -> (tile_rows//8, 8, 128) and add the row groups:
    # pure VPU vreg adds, no cross-lane/sublane movement.  Lane-dense store.
    out_ref[...] = val.reshape(tile_rows // 8, 8, _LANE).sum(axis=0)


def logcosh_loss(y_t: jax.Array, y_prime_t: jax.Array) -> jax.Array:
    """Pallas implementation of LogCoshLoss.forward."""
    assert y_t.shape == y_prime_t.shape
    n_true = int(y_t.size)

    yt = y_t.reshape(-1)
    yp = y_prime_t.reshape(-1)

    # View as rows of 128 lanes; tile = whole problem if small, else 2048 rows.
    rows = -(-n_true // _LANE)
    tile_rows = min(_MAX_TILE_ROWS, _round_up(rows, 8))
    padded_rows = _round_up(rows, tile_rows)
    padded_n = padded_rows * _LANE
    pad = padded_n - n_true

    if pad:
        yt = jnp.pad(yt, (0, pad))
        yp = jnp.pad(yp, (0, pad))

    yt = yt.reshape(padded_rows, _LANE)
    yp = yp.reshape(padded_rows, _LANE)

    num_blocks = padded_rows // tile_rows

    kernel = functools.partial(
        _logcosh_partial_kernel,
        tile_rows=tile_rows,
        n_true=n_true,
        masked=(pad != 0),
    )

    itemsize = jnp.dtype(y_t.dtype).itemsize + jnp.dtype(y_prime_t.dtype).itemsize
    cost = pl.CostEstimate(
        flops=5 * n_true,
        transcendentals=2 * n_true,
        bytes_accessed=n_true * itemsize + num_blocks * 8 * _LANE * 4,
    )

    partials = pl.pallas_call(
        kernel,
        out_shape=jax.ShapeDtypeStruct((num_blocks * 8, _LANE), jnp.float32),
        grid_spec=pltpu.PrefetchScalarGridSpec(
            num_scalar_prefetch=0,
            grid=(num_blocks,),
            in_specs=[
                pl.BlockSpec((tile_rows, _LANE), lambda i: (i, 0)),
                pl.BlockSpec((tile_rows, _LANE), lambda i: (i, 0)),
            ],
            out_specs=pl.BlockSpec((8, _LANE), lambda i: (i, 0)),
        ),
        compiler_params=pltpu.CompilerParams(
            dimension_semantics=("parallel",),
        ),
        cost_estimate=cost,
    )(yt, yp)

    # Single final reduce + mean (tiny vs. the mem-bound kernel itself).
    return jnp.sum(partials) / jnp.float32(n_true)


if __name__ == "__main__":
    key = jax.random.PRNGKey(0)
    k1, k2 = jax.random.split(key)

    loss_fn = jax.jit(logcosh_loss)

    # Primary shape consistent with the regression target tensor (NCHW-ish).
    shape = (2, 4, 16, 16)
    y_t = jax.random.normal(k1, shape, dtype=jnp.float32)
    y_prime_t = jax.random.normal(k2, shape, dtype=jnp.float32)

    loss = jax.block_until_ready(loss_fn(y_t, y_prime_t))
    ref = jnp.mean(jnp.log(jnp.cosh((y_t - y_prime_t) + 1e-12)))
    assert jnp.allclose(loss, ref, rtol=1e-4, atol=1e-6), (loss, ref)

    # Secondary ragged shape exercises the in-kernel tail masking path.
    shape2 = (3, 5, 7)
    a = jax.random.normal(k1, shape2, dtype=jnp.float32)
    b = jax.random.normal(k2, shape2, dtype=jnp.float32)
    loss2 = jax.block_until_ready(loss_fn(a, b))
    ref2 = jnp.mean(jnp.log(jnp.cosh((a - b) + 1e-12)))
    assert jnp.allclose(loss2, ref2, rtol=1e-4, atol=1e-6), (loss2, ref2)

    print("KERNEL_OK")
</pallas_src>

<mosaic_0001>
module attributes {stable_mosaic.version = 11 : i64} {
  func.func @_logcosh_partial_kernel(%arg0: i32, %arg1: memref<16x128xf32, #tpu.memory_space<vmem>>, %arg2: memref<16x128xf32, #tpu.memory_space<vmem>>, %arg3: memref<8x128xf32, #tpu.memory_space<vmem>>) attributes {dimension_semantics = [#tpu.dimension_semantics<parallel>], iteration_bounds = array<i64: 1>, scalar_prefetch = 0 : i64, scratch_operands = 0 : i64, tpu.core_type = #tpu.core_type<tc>, window_params = [{transform_indices = @transform_0, window_bounds = array<i64: 16, 128>}, {transform_indices = @transform_1, window_bounds = array<i64: 16, 128>}, {transform_indices = @transform_2, window_bounds = array<i64: 8, 128>}]} {
    %c0 = arith.constant 0 : index
    %c0_0 = arith.constant 0 : index
    %0 = vector.load %arg1[%c0, %c0_0] : memref<16x128xf32, #tpu.memory_space<vmem>>, vector<16x128xf32>
    %c0_1 = arith.constant 0 : index
    %c0_2 = arith.constant 0 : index
    %1 = vector.load %arg2[%c0_1, %c0_2] : memref<16x128xf32, #tpu.memory_space<vmem>>, vector<16x128xf32>
    %2 = arith.subf %0, %1 : vector<16x128xf32>
    %cst = arith.constant 9.99999996E-13 : f32
    %3 = vector.broadcast %cst : f32 to vector<16x128xf32>
    %4 = arith.addf %2, %3 : vector<16x128xf32>
    %5 = math.absf %4 : vector<16x128xf32>
    %cst_3 = arith.constant -2.000000e+00 : f32
    %6 = vector.broadcast %cst_3 : f32 to vector<16x128xf32>
    %7 = arith.mulf %6, %5 : vector<16x128xf32>
    %8 = math.exp %7 : vector<16x128xf32>
    %9 = math.log1p %8 : vector<16x128xf32>
    %10 = arith.addf %5, %9 : vector<16x128xf32>
    %cst_4 = arith.constant 0.693147182 : f32
    %11 = vector.broadcast %cst_4 : f32 to vector<16x128xf32>
    %12 = arith.subf %10, %11 : vector<16x128xf32>
    %13 = vector.shape_cast %12 : vector<16x128xf32> to vector<2x8x128xf32>
    %cst_5 = arith.constant dense<0.000000e+00> : vector<8x128xf32>
    %14 = vector.multi_reduction <add>, %13, %cst_5 [0] : vector<2x8x128xf32> to vector<8x128xf32>
    %c0_6 = arith.constant 0 : index
    %c0_7 = arith.constant 0 : index
    %15 = vector.load %arg3[%c0_6, %c0_7] : memref<8x128xf32, #tpu.memory_space<vmem>>, vector<8x128xf32>
    tpu.vector_store %arg3[%c0_6, %c0_7], %14 {strides = array<i32>} : memref<8x128xf32, #tpu.memory_space<vmem>>, vector<8x128xf32>,
    return
  }
  func.func @transform_0(%arg0: i32) -> (i32, i32) {
    %c0_i32 = arith.constant 0 : i32
    %c0_i32_0 = arith.constant 0 : i32
    return %arg0, %c0_i32 : i32, i32
  }
  func.func @transform_1(%arg0: i32) -> (i32, i32) {
    %c0_i32 = arith.constant 0 : i32
    %c0_i32_0 = arith.constant 0 : i32
    return %arg0, %c0_i32 : i32, i32
  }
  func.func @transform_2(%arg0: i32) -> (i32, i32) {
    %c0_i32 = arith.constant 0 : i32
    %c0_i32_0 = arith.constant 0 : i32
    return %arg0, %c0_i32 : i32, i32
  }
}

</mosaic_0001>

<bundles_post_ra>
// kernel: logcosh_loss.1
= control target key start
LH: loop header
LB: loop body
LE: loop exit
PB: predicated region body
PF: predicated region fallthrough
CT: control target
= control target key end

     0   :  { %s95_s0 = inlined_call_operand.vmem [shape: f32[16,128], index: 0, kind: input, shape index: {}]   ;;  %s96_s1 = inlined_call_operand.vmem [shape: f32[16,128], index: 1, kind: input, shape index: {}]   ;;  %s97_s2 = inlined_call_operand.vmem [shape: f32[8,128], index: 2, kind: output, shape index: {}]  }
   0x1   :  { %v11_v0 = vld [vmem:[%s95_s0] sm:$0xff]  ;;  %v12_v1 = vld [vmem:[%s95_s0 + $0x8] sm:$0xff] }
   0x2   :  { %v13_v2 = vld [vmem:[%s96_s1] sm:$0xff]  ;;  %v14_v3 = vld [vmem:[%s96_s1 + $0x8] sm:$0xff] }
   0x3   :  { %v15_v4 = vsub.f32 %v11_v0, %v13_v2  ;;  %v16_v5 = vsub.f32 %v12_v1, %v14_v3 }
   0x5   :  { %v17_v6 = vadd.f32 1e-12, %v15_v4  ;;  %v18_v7 = vadd.f32 1e-12, %v16_v5 }
   0x7   :  { %v19_v8 = vand.u32 2147483647, %v17_v6  ;;  %v20_v9 = vand.u32 2147483647, %v18_v7 }
   0x9   :  { %v21_v10 = vmul.f32 -2.0, %v19_v8  ;;  %v22_v11 = vmul.f32 -2.0, %v20_v9 }
   0xb   :  { %v23_v12 = vmul.f32 1.442695, %v21_v10  ;;  %v25_v13 = vmul.f32 1.442695, %v22_v11 }
   0xd   :  { %57 = vpow2.f32 %v23_v12 }
   0xe   :  { %59 = vpow2.f32 %v25_v13 }
  0x1a   :  { %v58_v14 = vpop.eup %57 }
  0x1b   :  { %v60_v15 = vpop.eup %59  ;;  %v27_v16 = vadd.f32 1.0, %v58_v14  ;;  %v30_v18 = vmul.f32 -0.5, %v58_v14  ;;  %v33_v21 = vand.u32 2147483647, %v58_v14 }
  0x1c   :  { %v36_v17 = vadd.f32 1.0, %v60_v15  ;;  %v39_v19 = vmul.f32 -0.5, %v60_v15  ;;  %v42_v23 = vand.u32 2147483647, %v60_v15 }
  0x1d   :  { %61 = vlog2.f32 %v27_v16  ;;  %v31_v20 = vadd.f32 1.0, %v30_v18  ;;  %vm34_vm0 = vcmp.lt.f32.partialorder %v33_v21, 0.0004427343 }
  0x1e   :  { %63 = vlog2.f32 %v36_v17  ;;  %v40_v22 = vadd.f32 1.0, %v39_v19  ;;  %vm43_vm1 = vcmp.lt.f32.partialorder %v42_v23, 0.0004427343 }
  0x1f   :  { %v32_v24 = vmul.f32 %v58_v14, %v31_v20 }
  0x20   :  { %v41_v26 = vmul.f32 %v60_v15, %v40_v22 }
  0x2a   :  { %v62_v25 = vpop.eup %61 }
  0x2b   :  { %v64_v27 = vpop.eup %63  ;;  %v29_v28 = vmul.f32 0.6931472, %v62_v25 }
  0x2c   :  { %v38_v29 = vmul.f32 0.6931472, %v64_v27 }
  0x2d   :  { %v35_v30 = vsel %vm34_vm0, %v32_v24, %v29_v28 }
  0x2e   :  { %v44_v31 = vsel %vm43_vm1, %v41_v26, %v38_v29  ;;  %v45_v32 = vadd.f32 %v35_v30, %v19_v8 }
  0x2f   :  { %v46_v33 = vadd.f32 %v44_v31, %v20_v9 }
  0x30   :  { %v55_v34 = vadd.f32 -0.6931472, %v45_v32 }
  0x31   :  { %v56_v35 = vadd.f32 -0.6931472, %v46_v33 }
  0x33   :  { %v49_v36 = vadd.f32 %v56_v35, %v55_v34 }
  0x35   :  { %50 = vst [vmem:[%s97_s2] sm:$0xff] %v49_v36 }

</bundles_post_ra>
